<compile_context>
chip_gen: v6e
topology: v6e:2x2x1
jax: 0.10.0
libtpu: 0.0.40
codegen_flags: <defaults>
</compile_context>

<pallas_src>
import functools
import math

import jax
import jax.numpy as jnp
from jax.experimental import pallas as pl
from jax.experimental.pallas import tpu as pltpu

_GELU_C = math.sqrt(2.0 / math.pi)


def _round_up(n, m):
    return ((n + m - 1) // m) * m


def _gelu_tanh(h):
    # tanh-approx GELU (matches BERT4NILM's GELU module); tanh runs on the EUP.
    return 0.5 * h * (1.0 + jnp.tanh(_GELU_C * (h + 0.044715 * (h * h * h))))


# ---------------------------------------------------------------------------
# Kernels
# ---------------------------------------------------------------------------

def _ffn_simple_kernel(x_ref, w1_ref, b1_ref, w2_ref, b2_ref, o_ref, *,
                       gelu_dtype):
    # First linear: (TM, d_model) @ (d_model, d_ff) on the MXU, f32 accumulate.
    h = jnp.dot(x_ref[...], w1_ref[...], preferred_element_type=jnp.float32)
    # Bias + GELU in gelu_dtype (bf16 for bf16 inputs -> half the VPU/EUP work
    # on v6e/v7x; f32 otherwise).
    # TODO(synk): gate the bf16 GELU on chip generation as well (v5e has no
    # bf16 VPU/EUP, so f32 remains preferable there even for bf16 inputs).
    h = h.astype(gelu_dtype) + b1_ref[...].astype(gelu_dtype)
    g = _gelu_tanh(h)
    # Second linear; keep the weight dtype on the MXU, accumulate in f32.
    y = jnp.dot(g.astype(w2_ref.dtype), w2_ref[...],
                preferred_element_type=jnp.float32)
    y = y + b2_ref[...].astype(jnp.float32)
    o_ref[...] = y.astype(o_ref.dtype)


def _ffn_chunked_kernel(x_ref, w1_ref, b1_ref, w2_ref, b2_ref, o_ref, acc_ref,
                        *, gelu_dtype):
    # Grid = (row_tiles, d_ff_chunks); d_ff (reduction dim of the 2nd matmul)
    # is the innermost, "arbitrary" axis, accumulated in an f32 VMEM scratch.
    k = pl.program_id(1)

    @pl.when(k == 0)
    def _():
        acc_ref[...] = jnp.zeros_like(acc_ref)

    h = jnp.dot(x_ref[...], w1_ref[...], preferred_element_type=jnp.float32)
    h = h.astype(gelu_dtype) + b1_ref[...].astype(gelu_dtype)
    g = _gelu_tanh(h)
    acc_ref[...] += jnp.dot(g.astype(w2_ref.dtype), w2_ref[...],
                            preferred_element_type=jnp.float32)

    @pl.when(k == pl.num_programs(1) - 1)
    def _():
        o_ref[...] = (acc_ref[...]
                      + b2_ref[...].astype(jnp.float32)).astype(o_ref.dtype)


# ---------------------------------------------------------------------------
# Capability probe / hardware budget / tile planning
# ---------------------------------------------------------------------------

@functools.lru_cache(maxsize=None)
def _supports_single_buffered_blocks():
    """One-time probe: can constant-index blocks be single-buffered?"""
    if not hasattr(pl, "Buffered"):
        return False
    try:
        def _copy(x_ref, o_ref):
            o_ref[...] = x_ref[...]

        probe = pl.pallas_call(
            _copy,
            out_shape=jax.ShapeDtypeStruct((8, 128), jnp.float32),
            grid=(2,),
            in_specs=[pl.BlockSpec((8, 128), lambda i: (0, 0),
                                   pipeline_mode=pl.Buffered(1))],
            out_specs=pl.BlockSpec((8, 128), lambda i: (0, 0)),
        )
        jax.block_until_ready(probe(jnp.zeros((8, 128), jnp.float32)))
        return True
    except Exception:
        return False


@functools.lru_cache(maxsize=None)
def _vmem_budget_bytes():
    """Generation-aware VMEM budget with headroom for Mosaic scratch."""
    try:
        cap = int(pltpu.get_tpu_info().vmem_capacity_bytes)
    except Exception:
        cap = 0
    if cap <= 0:
        cap = 64 << 20  # conservative fallback: assume v7x-sized VMEM (64 MiB)
    # ~25% headroom (48 MiB on v7x, 96 MiB on v5e/v6e), never below 32 MiB.
    return max(32 << 20, min((cap * 3) // 4, 100 << 20))


def _plan_tiles(rows, d_model_p, d_ff_p, act_b, w_b, sublane, budget,
                single_buffered_weights):
    """Pick (row_tile, ff_tile); ff_tile == d_ff_p means no d_ff chunking."""
    # Biggest row tile that (a) amortizes the ~0.35us/step grid overhead,
    # (b) leaves >= 2 grid steps so both v7x TensorCores get work, and
    # (c) fits the VMEM budget.
    rows_cap = _round_up(rows, sublane)
    two_step = _round_up(pl.cdiv(rows, 2), sublane) if rows > sublane else rows_cap
    target = min(1024, rows_cap, two_step)

    w_buf = 1 if single_buffered_weights else 2
    # Unchunked footprint: resident W1/W2/b1/b2 + double-buffered x/out tiles
    # + f32 h and g intermediates.
    wf = w_buf * (2 * d_model_p * d_ff_p + d_ff_p + d_model_p) * w_b
    per_row = 4 * d_model_p * act_b + 2 * d_ff_p * 4
    if wf < budget:
        fit = ((budget - wf) // per_row // sublane) * sublane
        if fit >= min(target, 256):
            return min(target, fit), d_ff_p

    # d_ff-chunked path: per-chunk weights double-buffered, f32 accumulator.
    rt = max(sublane, (min(512, target) // sublane) * sublane)
    fixed = (4 * rt * d_model_p * act_b      # x + out tiles, double-buffered
             + rt * d_model_p * 4            # f32 accumulator scratch
             + 2 * d_model_p * w_b)          # b2
    per_ft = 2 * rt * 4 + 2 * (2 * d_model_p + 1) * w_b
    fit = max(budget - fixed, 0) // per_ft
    ft = min(max(128, (fit // 128) * 128), d_ff_p)
    return rt, ft


# ---------------------------------------------------------------------------
# Wrapper
# ---------------------------------------------------------------------------

def positionwise_feed_forward(x, w1, b1, w2, b2, *, row_tile=None,
                              ff_tile=None):
    """x: (batch, seq, d_model); w1: (d_model, d_ff); w2: (d_ff, d_model)."""
    batch, seq, d_model = x.shape
    d_ff = w1.shape[1]
    rows = batch * seq

    act_b = jnp.dtype(x.dtype).itemsize
    w_b = jnp.dtype(w1.dtype).itemsize
    sublane = max(8, 32 // act_b)            # 8 for f32, 16 for bf16, 32 int8
    gelu_dtype = jnp.bfloat16 if x.dtype == jnp.bfloat16 else jnp.float32

    # Lane-dense feature dims (zero padding: K padding must be zero).
    d_model_p = _round_up(d_model, 128)
    d_ff_p = _round_up(d_ff, 128)

    budget = _vmem_budget_bytes()
    single_buf_w = _supports_single_buffered_blocks()

    plan_rt, plan_ft = _plan_tiles(rows, d_model_p, d_ff_p, act_b, w_b,
                                   sublane, budget, single_buf_w)
    if row_tile is None:
        row_tile = plan_rt
    if ff_tile is None:
        ff_tile = plan_ft
    row_tile = max(sublane,
                   min(_round_up(row_tile, sublane), _round_up(rows, sublane)))
    ff_tile = min(_round_up(ff_tile, 128), d_ff_p)
    d_ff_p = _round_up(d_ff_p, ff_tile)       # pad d_ff to a chunk multiple
    n_row = pl.cdiv(rows, row_tile)            # partial last block allowed
    n_ff = d_ff_p // ff_tile

    # Feature-dim zero padding only; rows are handled by partial blocks.
    x2d = x.reshape(rows, d_model)
    if d_model_p != d_model:
        x2d = jnp.pad(x2d, ((0, 0), (0, d_model_p - d_model)))
    w1_p = jnp.pad(w1, ((0, d_model_p - d_model), (0, d_ff_p - d_ff)))
    b1_p = jnp.pad(b1, (0, d_ff_p - d_ff)).reshape(1, d_ff_p)
    w2_p = jnp.pad(w2, ((0, d_ff_p - d_ff), (0, d_model_p - d_model)))
    b2_p = jnp.pad(b2, (0, d_model_p - d_model)).reshape(1, d_model_p)

    wmode = dict(pipeline_mode=pl.Buffered(1)) if single_buf_w else {}

    if n_ff == 1:
        # Whole d_ff resident: 1-D row grid, weights single-buffered/resident.
        kernel = functools.partial(_ffn_simple_kernel, gelu_dtype=gelu_dtype)
        grid = (n_row,)
        in_specs = [
            pl.BlockSpec((row_tile, d_model_p), lambda i: (i, 0)),   # x tile
            pl.BlockSpec((d_model_p, d_ff_p), lambda i: (0, 0), **wmode),  # W1
            pl.BlockSpec((1, d_ff_p), lambda i: (0, 0), **wmode),          # b1
            pl.BlockSpec((d_ff_p, d_model_p), lambda i: (0, 0), **wmode),  # W2
            pl.BlockSpec((1, d_model_p), lambda i: (0, 0), **wmode),       # b2
        ]
        out_specs = pl.BlockSpec((row_tile, d_model_p), lambda i: (i, 0))
        scratch = []
        dims = ("parallel",)
        w_buf = 1 if single_buf_w else 2
        needed = (w_buf * (2 * d_model_p * d_ff_p + d_ff_p + d_model_p) * w_b
                  + 4 * row_tile * d_model_p * act_b
                  + 2 * row_tile * d_ff_p * 4)
    else:
        # d_ff-chunked accumulate path (large d_ff / small-VMEM chips).
        kernel = functools.partial(_ffn_chunked_kernel, gelu_dtype=gelu_dtype)
        grid = (n_row, n_ff)
        in_specs = [
            pl.BlockSpec((row_tile, d_model_p), lambda i, k: (i, 0)),  # x
            pl.BlockSpec((d_model_p, ff_tile), lambda i, k: (0, k)),   # W1 chunk
            pl.BlockSpec((1, ff_tile), lambda i, k: (0, k)),           # b1 chunk
            pl.BlockSpec((ff_tile, d_model_p), lambda i, k: (k, 0)),   # W2 chunk
            pl.BlockSpec((1, d_model_p), lambda i, k: (0, 0)),         # b2
        ]
        out_specs = pl.BlockSpec((row_tile, d_model_p), lambda i, k: (i, 0))
        scratch = [pltpu.VMEM((row_tile, d_model_p), jnp.float32)]
        dims = ("parallel", "arbitrary")
        needed = (2 * (2 * d_model_p * ff_tile + ff_tile + d_model_p) * w_b
                  + 4 * row_tile * d_model_p * act_b
                  + row_tile * d_model_p * 4
                  + 2 * row_tile * ff_tile * 4)

    vmem_limit = int(min(budget, max(32 << 20, (needed * 3) // 2)))

    cost = pl.CostEstimate(
        flops=int(4 * rows * d_model_p * d_ff_p),
        transcendentals=int(rows * d_ff_p),
        bytes_accessed=int(
            x2d.size * x2d.dtype.itemsize
            + w1_p.size * w1_p.dtype.itemsize + b1_p.size * b1_p.dtype.itemsize
            + w2_p.size * w2_p.dtype.itemsize + b2_p.size * b2_p.dtype.itemsize
            + rows * d_model_p * act_b),
    )

    out2d = pl.pallas_call(
        kernel,
        out_shape=jax.ShapeDtypeStruct((rows, d_model_p), x.dtype),
        grid_spec=pltpu.PrefetchScalarGridSpec(
            num_scalar_prefetch=0,
            grid=grid,
            in_specs=in_specs,
            out_specs=out_specs,
            scratch_shapes=scratch),
        compiler_params=pltpu.CompilerParams(
            dimension_semantics=dims,
            vmem_limit_bytes=vmem_limit),
        cost_estimate=cost,
    )(x2d, w1_p, b1_p, w2_p, b2_p)

    if d_model_p != d_model:
        out2d = out2d[:, :d_model]
    return out2d.reshape(batch, seq, d_model)


# ---------------------------------------------------------------------------
# Reference + self-test
# ---------------------------------------------------------------------------

def _reference(x, w1, b1, w2, b2):
    x32 = x.astype(jnp.float32)
    h = (jnp.einsum("bsd,df->bsf", x32, w1.astype(jnp.float32))
         + b1.astype(jnp.float32))
    g = 0.5 * h * (1.0 + jnp.tanh(_GELU_C * (h + 0.044715 * h ** 3)))
    return (jnp.einsum("bsf,fd->bsd", g, w2.astype(jnp.float32))
            + b2.astype(jnp.float32))


if __name__ == "__main__":
    key = jax.random.PRNGKey(0)

    def _check(batch, seq, d_model, d_ff, tag, dtype=jnp.float32,
               atol=1e-5, rtol=1e-5, **kw):
        k = jax.random.fold_in(key, tag)
        k_x, k_w1, k_b1, k_w2, k_b2 = jax.random.split(k, 5)
        x = jax.random.normal(k_x, (batch, seq, d_model), dtype=jnp.float32)
        w1 = jax.random.normal(k_w1, (d_model, d_ff), jnp.float32) * 0.05
        b1 = jax.random.normal(k_b1, (d_ff,), jnp.float32) * 0.05
        w2 = jax.random.normal(k_w2, (d_ff, d_model), jnp.float32) * 0.05
        b2 = jax.random.normal(k_b2, (d_model,), jnp.float32) * 0.05
        x, w1, b1, w2, b2 = (a.astype(dtype) for a in (x, w1, b1, w2, b2))

        out = jax.block_until_ready(
            positionwise_feed_forward(x, w1, b1, w2, b2, **kw))
        ref = _reference(x, w1, b1, w2, b2)
        assert out.shape == (batch, seq, d_model)
        assert out.dtype == x.dtype
        assert jnp.allclose(out.astype(jnp.float32), ref, atol=atol,
                            rtol=rtol), f"mismatch vs reference (tag={tag})"

    # Original demo shape (feature dims lane-padded to 128 internally).
    _check(batch=2, seq=8, d_model=32, d_ff=64, tag=0)
    # Odd shapes: exercises partial row blocks + feature padding.
    _check(batch=3, seq=7, d_model=48, d_ff=96, tag=1)
    # Forced d_ff-chunked accumulate path (3 chunks of 128).
    _check(batch=2, seq=16, d_model=64, d_ff=384, tag=2, ff_tile=128,
           atol=2e-5, rtol=2e-5)
    # bf16 inputs: GELU/bias math runs in bf16 (relaxed tolerance).
    _check(batch=2, seq=128, d_model=64, d_ff=256, tag=3, dtype=jnp.bfloat16,
           atol=5e-2, rtol=5e-2)

    print("KERNEL_OK")
</pallas_src>

<mosaic_0001>
module attributes {stable_mosaic.version = 11 : i64} {
  func.func @_copy(%arg0: i32, %arg1: memref<8x128xf32, #tpu.memory_space<vmem>>, %arg2: memref<8x128xf32, #tpu.memory_space<vmem>>) attributes {dimension_semantics = [#tpu.dimension_semantics<arbitrary>], iteration_bounds = array<i64: 2>, scalar_prefetch = 0 : i64, scratch_operands = 0 : i64, tpu.core_type = #tpu.core_type<tc>, window_params = [{pipeline_mode = #tpu.pipeline_mode<synchronous>, transform_indices = @transform_0, window_bounds = array<i64: 8, 128>}, {pipeline_mode = #tpu.pipeline_mode<synchronous>, transform_indices = @transform_1, window_bounds = array<i64: 8, 128>}]} {
    %c0 = arith.constant 0 : index
    %c0_0 = arith.constant 0 : index
    %0 = vector.load %arg1[%c0, %c0_0] : memref<8x128xf32, #tpu.memory_space<vmem>>, vector<8x128xf32>
    %c0_1 = arith.constant 0 : index
    %c0_2 = arith.constant 0 : index
    %1 = vector.load %arg2[%c0_1, %c0_2] : memref<8x128xf32, #tpu.memory_space<vmem>>, vector<8x128xf32>
    tpu.vector_store %arg2[%c0_1, %c0_2], %0 {strides = array<i32>} : memref<8x128xf32, #tpu.memory_space<vmem>>, vector<8x128xf32>,
    return
  }
  func.func @transform_0(%arg0: i32) -> (i32, i32) {
    %c0_i32 = arith.constant 0 : i32
    %c0_i32_0 = arith.constant 0 : i32
    %c0_i32_1 = arith.constant 0 : i32
    return %c0_i32, %c0_i32_0 : i32, i32
  }
  func.func @transform_1(%arg0: i32) -> (i32, i32) {
    %c0_i32 = arith.constant 0 : i32
    %c0_i32_0 = arith.constant 0 : i32
    %c0_i32_1 = arith.constant 0 : i32
    return %c0_i32, %c0_i32_0 : i32, i32
  }
}

module attributes {stable_mosaic.version = 11 : i64} {
  func.func @_ffn_simple_kernel(%arg0: i32, %arg1: memref<8x128xf32, #tpu.memory_space<vmem>>, %arg2: memref<128x128xf32, #tpu.memory_space<vmem>>, %arg3: memref<1x128xf32, #tpu.memory_space<vmem>>, %arg4: memref<128x128xf32, #tpu.memory_space<vmem>>, %arg5: memref<1x128xf32, #tpu.memory_space<vmem>>, %arg6: memref<8x128xf32, #tpu.memory_space<vmem>>) attributes {dimension_semantics = [#tpu.dimension_semantics<parallel>], iteration_bounds = array<i64: 2>, scalar_prefetch = 0 : i64, scratch_operands = 0 : i64, tpu.core_type = #tpu.core_type<tc>, window_params = [{transform_indices = @transform_0, window_bounds = array<i64: 8, 128>}, {pipeline_mode = #tpu.pipeline_mode<synchronous>, transform_indices = @transform_1, window_bounds = array<i64: 128, 128>}, {pipeline_mode = #tpu.pipeline_mode<synchronous>, transform_indices = @transform_2, window_bounds = array<i64: 1, 128>}, {pipeline_mode = #tpu.pipeline_mode<synchronous>, transform_indices = @transform_3, window_bounds = array<i64: 128, 128>}, {pipeline_mode = #tpu.pipeline_mode<synchronous>, transform_indices = @transform_4, window_bounds = array<i64: 1, 128>}, {transform_indices = @transform_5, window_bounds = array<i64: 8, 128>}]} {
    %c0 = arith.constant 0 : index
    %c0_0 = arith.constant 0 : index
    %0 = vector.load %arg1[%c0, %c0_0] : memref<8x128xf32, #tpu.memory_space<vmem>>, vector<8x128xf32>
    %c0_1 = arith.constant 0 : index
    %c0_2 = arith.constant 0 : index
    %1 = vector.load %arg2[%c0_1, %c0_2] : memref<128x128xf32, #tpu.memory_space<vmem>>, vector<128x128xf32>
    %cst = arith.constant dense<0.000000e+00> : vector<8x128xf32>
    %2 = tpu.matmul %0, %1, %cst {dimension_numbers = #tpu.dot_dimension_numbers<[1], [0], [0], [1], [0, 0, 1, 1], [], []>} : vector<8x128xf32>, vector<128x128xf32>, vector<8x128xf32> -> vector<8x128xf32>
    %c0_3 = arith.constant 0 : index
    %c0_4 = arith.constant 0 : index
    %3 = vector.load %arg3[%c0_3, %c0_4] : memref<1x128xf32, #tpu.memory_space<vmem>>, vector<1x128xf32>
    %4 = vector.broadcast %3 : vector<1x128xf32> to vector<8x128xf32>
    %5 = arith.addf %2, %4 : vector<8x128xf32>
    %cst_5 = arith.constant 5.000000e-01 : f32
    %6 = vector.broadcast %cst_5 : f32 to vector<8x128xf32>
    %7 = arith.mulf %6, %5 : vector<8x128xf32>
    %8 = arith.mulf %5, %5 : vector<8x128xf32>
    %9 = arith.mulf %8, %5 : vector<8x128xf32>
    %cst_6 = arith.constant 4.471500e-02 : f32
    %10 = vector.broadcast %cst_6 : f32 to vector<8x128xf32>
    %11 = arith.mulf %10, %9 : vector<8x128xf32>
    %12 = arith.addf %5, %11 : vector<8x128xf32>
    %cst_7 = arith.constant 0.797884583 : f32
    %13 = vector.broadcast %cst_7 : f32 to vector<8x128xf32>
    %14 = arith.mulf %13, %12 : vector<8x128xf32>
    %15 = math.tanh %14 : vector<8x128xf32>
    %cst_8 = arith.constant 1.000000e+00 : f32
    %16 = vector.broadcast %cst_8 : f32 to vector<8x128xf32>
    %17 = arith.addf %16, %15 : vector<8x128xf32>
    %18 = arith.mulf %7, %17 : vector<8x128xf32>
    %c0_9 = arith.constant 0 : index
    %c0_10 = arith.constant 0 : index
    %19 = vector.load %arg4[%c0_9, %c0_10] : memref<128x128xf32, #tpu.memory_space<vmem>>, vector<128x128xf32>
    %cst_11 = arith.constant dense<0.000000e+00> : vector<8x128xf32>
    %20 = tpu.matmul %18, %19, %cst_11 {dimension_numbers = #tpu.dot_dimension_numbers<[1], [0], [0], [1], [0, 0, 1, 1], [], []>} : vector<8x128xf32>, vector<128x128xf32>, vector<8x128xf32> -> vector<8x128xf32>
    %c0_12 = arith.constant 0 : index
    %c0_13 = arith.constant 0 : index
    %21 = vector.load %arg5[%c0_12, %c0_13] : memref<1x128xf32, #tpu.memory_space<vmem>>, vector<1x128xf32>
    %22 = vector.broadcast %21 : vector<1x128xf32> to vector<8x128xf32>
    %23 = arith.addf %20, %22 : vector<8x128xf32>
    %c0_14 = arith.constant 0 : index
    %c0_15 = arith.constant 0 : index
    %24 = vector.load %arg6[%c0_14, %c0_15] : memref<8x128xf32, #tpu.memory_space<vmem>>, vector<8x128xf32>
    tpu.vector_store %arg6[%c0_14, %c0_15], %23 {strides = array<i32>} : memref<8x128xf32, #tpu.memory_space<vmem>>, vector<8x128xf32>,
    return
  }
  func.func @transform_0(%arg0: i32) -> (i32, i32) {
    %c0_i32 = arith.constant 0 : i32
    %c0_i32_0 = arith.constant 0 : i32
    return %arg0, %c0_i32 : i32, i32
  }
  func.func @transform_1(%arg0: i32) -> (i32, i32) {
    %c0_i32 = arith.constant 0 : i32
    %c0_i32_0 = arith.constant 0 : i32
    %c0_i32_1 = arith.constant 0 : i32
    return %c0_i32, %c0_i32_0 : i32, i32
  }
  func.func @transform_2(%arg0: i32) -> (i32, i32) {
    %c0_i32 = arith.constant 0 : i32
    %c0_i32_0 = arith.constant 0 : i32
    %c0_i32_1 = arith.constant 0 : i32
    return %c0_i32, %c0_i32_0 : i32, i32
  }
  func.func @transform_3(%arg0: i32) -> (i32, i32) {
    %c0_i32 = arith.constant 0 : i32
    %c0_i32_0 = arith.constant 0 : i32
    %c0_i32_1 = arith.constant 0 : i32
    return %c0_i32, %c0_i32_0 : i32, i32
  }
  func.func @transform_4(%arg0: i32) -> (i32, i32) {
    %c0_i32 = arith.constant 0 : i32
    %c0_i32_0 = arith.constant 0 : i32
    %c0_i32_1 = arith.constant 0 : i32
    return %c0_i32, %c0_i32_0 : i32, i32
  }
  func.func @transform_5(%arg0: i32) -> (i32, i32) {
    %c0_i32 = arith.constant 0 : i32
    %c0_i32_0 = arith.constant 0 : i32
    return %arg0, %c0_i32 : i32, i32
  }
}

</mosaic_0001>

<bundles_post_ra>
// kernel: tpu_custom_call.1
= control target key start
LH: loop header
LB: loop body
LE: loop exit
PB: predicated region body
PF: predicated region fallthrough
CT: control target
= control target key end

     0   :  { %6 = vsyncpa [#allocation3], 0  ;;  %s304_s0 = inlined_call_operand.hbm [shape: f32[8,128], index: 0, kind: input, shape index: {}]   ;;  %s305_s1 = inlined_call_operand.hbm [shape: f32[8,128], index: 1, kind: output, shape index: {}]  }
   0x1   :  { %7 = vsyncpa [#allocation4], 0  ;;  %s257_s6 = smov 0  }
   0x2 LB: > { %s144_s7 = sadd.s32 4294967295, %s243_s6   ;;  %p145_p0 = scmp.ge.s32.totalorder %s243_s6, 1  ;;  %s243_s6 = sphi %s257_s6, %s13_s6  }
   0x3   : > { %p60_p1 = scmp.lt.s32.totalorder %s243_s6, 3  ;;  %p269_p3 = scmp.eq.s32.totalorder %s144_s7, 0 }
   0x4   : > { %s245_s10 = smov [#allocation2]  }
   0x5   : > { %p265_p2 = pnand %p145_p0, %p60_p1  ;;  %s73_s11 = sshll.u32 %s245_s10, 4  ;;  %s74_s11 = int_to_ptr.vmem [resolvable:$true] %s73_s11 }
   0x6   : > { %s190_s12 = scalar_lea.vmem %s74_s11, 128  ;;  %p198_p10 = scmp.lt.s32.totalorder %s74_s11, %s74_s11 }
   0x7   : > { %p161_p4 = pneg %p265_p2  ;;  %p191_p7 = scmp.ne.s32.totalorder %s74_s11, %s190_s12 }
   0x8   : > { %p199_p11 = scmp.lt.s32.totalorder %s190_s12, %s190_s12 }
   0x9   : > { %p162_p5 = pnand %p269_p3, %p161_p4 }
   0xa   : > { %p200_p12 = por %p199_p11, %p198_p10 }
   0xb   : > { %p181_p6 = pneg %p162_p5 }
   0xd   : > { %p193_p8 = pnand %p191_p7, %p181_p6 }
   0xf   : > { %p194_p9 = pneg %p193_p8 }
  0x11   : > { %p201_p13 = pnand %p200_p12, %p194_p9 }
  0x13   : > { %204 = shalt.err (!%p201_p13)
}
  0x14   : > { %164 = dma.hbm_to_vmem [thread:$0]  (!%p162_p5), %s304_s0, 128, %s74_s11, [#allocation3]  }
  0x15   : > { %86 = sbr.rel (%p265_p2) target bundleno = 42 (0x2a), region = 24 }
  0x1a   : > { %234 = dma.done.wait (%p269_p3), [#allocation3], 128  }
  0x1b   : > { %236 = vsyncadd (%p269_p3), [#allocation3], 4294967168  ;;  %s246_s15 = smov [#allocation5]   ;;  %p286_p0 = scmp.eq.s32.totalorder %s144_s7, 1  ;;  %v96_v0 = vld [vmem:[#allocation2] sm:$0xff] }
  0x1c   : > { %s105_s16 = sshll.u32 %s246_s15, 4  ;;  %97 = vst [vmem:[#allocation5] sm:$0xff] %v96_v0  ;;  %s106_s16 = int_to_ptr.vmem [resolvable:$true] %s105_s16 }
  0x1d   : > { %s205_s18 = scalar_lea.vmem %s106_s16, 128  ;;  %p212_p5 = scmp.lt.s32.totalorder %s106_s16, %s106_s16 }
  0x1e   : > { %p206_p1 = scmp.ne.s32.totalorder %s106_s16, %s205_s18  ;;  %p213_p6 = scmp.lt.s32.totalorder %s205_s18, %s205_s18 }
  0x20   : > { %p207_p2 = pnand %p206_p1, %p286_p0  ;;  %p214_p7 = por %p213_p6, %p212_p5 }
  0x22   : > { %p208_p4 = pneg %p207_p2 }
  0x24   : > { %p215_p8 = pnand %p214_p7, %p208_p4 }
  0x26   : > { %218 = shalt.err (!%p215_p8)
}
  0x27   : > { %158 = dma.vmem_to_hbm [thread:$0]  (%p286_p0), %s106_s16, 128, %s305_s1, [#allocation4]  }
  0x28   : > { %238 = dma.done.wait (%p286_p0), [#allocation4], 128  }
  0x29   : > { %240 = vsyncadd (%p286_p0), [#allocation4], 4294967168 }
  0x2a PF: > { %s13_s6 = sadd.s32 1, %s243_s6  }
  0x2b   : > { %p10_p3 = scmp.ge.s32.totalorder %s13_s6, 4  }
  0x2d   :  { %12 = sbr.rel (!%p10_p3) target bundleno = 2 (0x2), region = 53 }
  0x32   :  { %118 = vsyncpa [#allocation3], 1 }
  0x33   :  { %120 = vsyncpa [#allocation3 + $0x1], 1 }
  0x34   :  { %121 = vsyncpa [#allocation4], 1 }
  0x35   :  { %123 = vsyncpa [#allocation4 + $0x1], 1 }

// kernel: tpu_custom_call.1
= control target key start
LH: loop header
LB: loop body
LE: loop exit
PB: predicated region body
PF: predicated region fallthrough
CT: control target
= control target key end

     0   :  { %10 = vsyncpa [#allocation3], 0  ;;  %s1170_s0 = inlined_call_operand.hbm [shape: f32[16,128], index: 0, kind: input, shape index: {}]   ;;  %s1171_s1 = inlined_call_operand.hbm [shape: f32[128,128], index: 1, kind: input, shape index: {}]   ;;  %s1172_s2 = inlined_call_operand.vmem [shape: f32[1,128], index: 2, kind: input, shape index: {}]   ;;  %s1173_s3 = inlined_call_operand.hbm [shape: f32[128,128], index: 3, kind: input, shape index: {}]   ;;  %s1174_s4 = inlined_call_operand.vmem [shape: f32[1,128], index: 4, kind: input, shape index: {}]   ;;  %s1175_s5 = inlined_call_operand.hbm [shape: f32[16,128], index: 5, kind: output, shape index: {}]  }
   0x1   :  { %12 = vsyncpa [#allocation3 + $0x1], 0 }
   0x2   :  { %13 = vsyncpa [#allocation6], 0 }
   0x3   :  { %14 = vsyncpa [#allocation4], 0 }
   0x4   :  { %16 = vsyncpa [#allocation4 + $0x1], 0  ;;  %s952_s18 = smov 0   ;;  %s954_s19 = smov 0  }
   0x5   :  { %s956_s20 = smov 0   ;;  %s958_s21 = smov 0  }
   0x6 LB: > { %s973_s22 = sadd.s32 4294967295, %s912_s21   ;;  %s569_s23 = sadd.s32 4294967294, %s912_s21   ;;  %s912_s21 = sphi %s958_s21, %s1197_s21   ;;  %s908_s20 = sphi %s956_s20, %s1196_s20   ;;  %s904_s19 = sphi %s954_s19, %s1195_s19   ;;  %s900_s18 = sphi %s952_s18, %s1194_s18  }
   0x7   : > { %p42_p0 = scmp.ne.s32.totalorder %s904_s19, %s900_s18  ;;  %p1176_p1 = scmp.eq.s32.totalorder %s973_s22, 0 }
   0x8   : > { %p156_p3 = scmp.eq.s32.totalorder %s569_s23, 1  ;;  %p570_p5 = scmp.ge.s32.totalorder %s912_s21, 1 }
   0x9   : > { %p982_p4 = por %p1176_p1, %p42_p0  ;;  %p163_p7 = scmp.lt.s32.totalorder %s912_s21, 3 }
   0xa   : > { %p987_p6 = por %p156_p3, %p42_p0  ;;  %s914_s27 = smov [#allocation5]  }
   0xb   : > { %s1180_s24 = scalar_select %p982_p4, 1, 0 }
   0xc   : > { %s1181_s25 = scalar_select %p987_p6, 1, 0 }
   0xd   : > { %p992_p8 = pnand %p570_p5, %p163_p7  ;;  %s175_s28 = sshll.u32 %s914_s27, 4  ;;  %s176_s28 = int_to_ptr.vmem [resolvable:$true] %s175_s28 }
   0xe   : > { %s915_s30 = smov [#allocation7]   ;;  %s775_s7 = scalar_lea.vmem %s176_s28, 2048 }
   0xf   : > { %s1182_s26 = scalar_select %p992_p8, 1, 0 }
  0x10   : > { %p703_p9 = pneg %p992_p8  ;;  %s191_s6 = sshll.u32 %s915_s30, 4  ;;  %s192_s6 = int_to_ptr.vmem [resolvable:$true] %s191_s6 }
  0x11   : > { %p776_p13 = scmp.ne.s32.totalorder %s176_s28, %s775_s7  ;;  %p783_p5 = scmp.lt.s32.totalorder %s176_s28, %s176_s28 }
  0x12   : > { %p1001_p11 = pnand %p703_p9, %p1176_p1  ;;  %p784_p7 = scmp.lt.s32.totalorder %s775_s7, %s775_s7 }
  0x14   : > { %p766_p12 = pneg %p1001_p11  ;;  %p785_p10 = por %p784_p7, %p783_p5 }
  0x16   : > { %p778_p0 = pnand %p776_p13, %p766_p12 }
  0x18   : > { %p779_p3 = pneg %p778_p0 }
  0x1a   : > { %p786_p9 = pnand %p785_p10, %p779_p3 }
  0x1c   : > { %789 = shalt.err (!%p786_p9)
}
  0x1d   : > { %s916_s8 = smov 128   ;;  %s917_s9 = smov 8  }
  0x1e   : > { %706 = dma.hbm_to_vmem [thread:$0]  (!%p1001_p11), %s1171_s1, 2048, %s176_s28, [#allocation6], %s916_s8, %s916_s8, %s917_s9  }
  0x1f   : > { %s801_s12 = scalar_lea.vmem %s192_s6, 2048  ;;  %p809_p2 = scmp.lt.s32.totalorder %s192_s6, %s192_s6 }
  0x20   : > { %p802_p1 = scmp.ne.s32.totalorder %s192_s6, %s801_s12  ;;  %p810_p6 = scmp.lt.s32.totalorder %s801_s12, %s801_s12 }
  0x22   : > { %p804_p13 = pnand %p802_p1, %p766_p12  ;;  %p811_p5 = por %p810_p6, %p809_p2 }
  0x24   : > { %p805_p0 = pneg %p804_p13 }
  0x26   : > { %p812_p10 = pnand %p811_p5, %p805_p0 }
  0x28   : > { %815 = shalt.err (!%p812_p10)
}
  0x29   : > { %709 = dma.hbm_to_vmem [thread:$0]  (!%p1001_p11), %s1173_s3, 2048, %s192_s6, [#allocation6], %s916_s8, %s916_s8, %s917_s9  }
  0x2a   : > { %s1024_s15 = sadd.s32 1, %s912_s21   ;;  %s29_s16 = sadd.s32 1, %s908_s20 }
  0x2b   : > { %s26_s17 = ssub.s32 %s912_s21, %s1024_s15  ;;  %p36_p1 = scmp.ne.s32.totalorder %s908_s20, %s904_s19 }
  0x2c   : > { %p27_p2 = scmp.eq.s32.totalorder %s26_s17, 0  ;;  %p37_p6 = scmp.eq.s32.totalorder %s912_s21, 0 }
  0x2d   : > { %p1184_p12 = scmp.eq.s32.totalorder %s973_s22, 1  ;;  %p720_p7 = scmp.lt.s32.totalorder %s912_s21, 2 }
  0x2e   : > { %s1040_s27 = scalar_select %p27_p2, %s908_s20, %s29_s16  }
  0x2f   : > { %p1034_p3 = por %p1184_p12, %p36_p1  ;;  %p38_p9 = por %p37_p6, %p36_p1 }
  0x30   : > { %s208_s28 = sand.u32 1, %s908_s20   ;;  %s575_s30 = sshll.u32 %s912_s21, 7 }
  0x31   : > { %s1185_s23 = scalar_select %p1034_p3, 1, 0 }
  0x32   : > { %s574_s29 = sshll.u32 %s208_s28, 3  ;;  %s1047_s8 = scalar_lea.hbm %s1170_s0, %s575_s30 }
  0x33   : > { %s212_s9 = scalar_lea.vmem [#allocation2], %s574_s29  ;;  %p1049_p11 = pnand %p720_p7, %p38_p9 }
  0x34   : > { %s219_s10 = sshll.u32 %s212_s9, 4  ;;  %s209_s12 = scalar_lea.sflag [#allocation3], %s208_s28  ;;  %s220_s10 = int_to_ptr.vmem [resolvable:$true] %s219_s10 }
  0x35   : > { %s816_s13 = scalar_lea.hbm %s1047_s8, 128  ;;  %p818_p0 = pneg %p1049_p11 }
  0x36   : > { %p817_p13 = scmp.ne.s32.totalorder %s1047_s8, %s816_s13  ;;  %s821_s17 = scalar_lea.hbm %s1170_s0, 256 }
  0x37   : > { %p822_p1 = scmp.lt.s32.totalorder %s1047_s8, %s1170_s0  ;;  %p823_p2 = scmp.lt.s32.totalorder %s821_s17, %s816_s13 }
  0x38   : > { %p819_p5 = pnand %p818_p0, %p817_p13 }
  0x39   : > { %p824_p6 = por %p823_p2, %p822_p1 }
  0x3a   : > { %p820_p10 = pneg %p819_p5 }
  0x3c   : > { %p825_p12 = pnand %p824_p6, %p820_p10 }
  0x3e   : > { %828 = shalt.err (!%p825_p12)
}
  0x3f   : > { %s829_s6 = scalar_lea.vmem %s220_s10, 128  ;;  %s918_s28 = smov [#allocation2]  }
  0x40   : > { %p830_p7 = scmp.ne.s32.totalorder %s220_s10, %s829_s6  ;;  %s834_s7 = sshll.u32 %s918_s28, 4  ;;  %s835_s7 = int_to_ptr.vmem [resolvable:$false] %s834_s7 }
  0x41   : > { %s836_s9 = scalar_lea.vmem %s835_s7, 256  ;;  %p837_p13 = scmp.lt.s32.totalorder %s220_s10, %s835_s7 }
  0x42   : > { %p832_p9 = pnand %p830_p7, %p818_p0  ;;  %p838_p5 = scmp.lt.s32.totalorder %s836_s9, %s829_s6 }
  0x44   : > { %p833_p3 = pneg %p832_p9  ;;  %p839_p4 = por %p838_p5, %p837_p13 }
  0x46   : > { %p840_p8 = pnand %p839_p4, %p833_p3 }
  0x48   : > { %843 = shalt.err (!%p840_p8)
}
  0x49   : > { %713 = dma.hbm_to_vmem [thread:$0]  (!%p1049_p11), %s1047_s8, 128, %s220_s10, %s209_s12  }
  0x4a   : > { %p1187_p10 = scmp.ne.s32.totalorder %s1182_s26, 0 }
  0x4b   : > { %s1070_s13 = sand.u32 (!%p1187_p10), 1, %s904_s19   ;;  %p1188_p4 = scmp.ne.s32.totalorder (!%p1187_p10), %s1180_s24, 0 }
  0x4c   : > { %228 = sbr.rel (%p1187_p10) target bundleno = 550 (0x226), region = 40  ;;  %s577_s14 = sshll.u32 (!%p1187_p10), %s1070_s13, 3 }
  0x4d   : > { %s231_s16 = scalar_lea.sflag (!%p1187_p10), [#allocation3], %s1070_s13  ;;  %s1076_s17 = scalar_lea.vmem (!%p1187_p10), [#allocation2], %s577_s14 }
  0x51   : > { %887 = dma.done.wait (%p1188_p4), %s231_s16, 128  }
  0x52   : > { %889 = vsyncadd (%p1188_p4), %s231_s16, 4294967168  ;;  %p1189_p8 = scmp.eq.s32.totalorder %s973_s22, 0 }
  0x54   : > { %891 = dma.done.wait (%p1189_p8), [#allocation6], 4096   ;;  %p1190_p3 = pmov %p1189_p8 }
  0x55   : > { %v919_v0 = vmov 0.0   ;;  %vm920_vm0 = vmmov 0   ;;  %v285_v1 = vld [vmem:[#allocation5 + $0x78] sm:$0xff]  ;;  %v284_v2 = vld [vmem:[#allocation5 + $0x70] sm:$0xff]  ;;  %v283_v3 = vld [vmem:[#allocation5 + $0x68] sm:$0xff]  ;;  %s584_s11 = sshll.u32 %s973_s22, 7 }
  0x56   : > { %893 = vsyncadd (%p1190_p3), [#allocation6], 4294963200  ;;  %621 = vmatprep.subr.mxu0 %v919_v0  ;;  %653 = vmatprep.mubr.msk.f32.mxu0 %vm920_vm0, %v919_v0  ;;  %v282_v4 = vld [vmem:[#allocation5 + $0x60] sm:$0xff]  ;;  %v281_v5 = vld [vmem:[#allocation5 + $0x58] sm:$0xff]  ;;  %s268_s12 = scalar_lea.vmem [#allocation8], %s577_s14  ;;  %s1133_s28 = scalar_lea.hbm %s1175_s5, %s584_s11 }
  0x57   : > { %656 = vmatprep.subr.mxu1 %v919_v0  ;;  %688 = vmatprep.mubr.msk.f32.mxu1 %vm920_vm0, %v919_v0  ;;  %v280_v6 = vld [vmem:[#allocation5 + $0x50] sm:$0xff]  ;;  %v279_v7 = vld [vmem:[#allocation5 + $0x48] sm:$0xff]  ;;  %v278_v8 = vld [vmem:[#allocation5 + $0x40] sm:$0xff]  ;;  %s480_s30 = sshll.u32 %s268_s12, 4  ;;  %s467_s7 = scalar_lea.sflag [#allocation4], %s1070_s13  ;;  %s481_s30 = int_to_ptr.vmem [resolvable:$true] %s480_s30 }
  0x58   : > { %622 = vmatpush3.msra.mxu0 %v285_v1  ;;  %v277_v9 = vld [vmem:[#allocation5 + $0x38] sm:$0xff]  ;;  %v276_v10 = vld [vmem:[#allocation5 + $0x30] sm:$0xff]  ;;  %v275_v11 = vld [vmem:[#allocation5 + $0x28] sm:$0xff]  ;;  %s844_s9 = scalar_lea.vmem %s481_s30, 128  ;;  %p1191_p0 = scmp.ne.s32.totalorder %s1185_s23, 0 }
  0x59   : > { %623 = vmatprep.subr.mxu0 %v919_v0  ;;  %v274_v12 = vld [vmem:[#allocation5 + $0x20] sm:$0xff]  ;;  %v273_v13 = vld [vmem:[#allocation5 + $0x18] sm:$0xff]  ;;  %v272_v14 = vld [vmem:[#allocation5 + $0x10] sm:$0xff]  ;;  %p845_p11 = scmp.ne.s32.totalorder %s481_s30, %s844_s9  ;;  %s921_s22 = smov [#allocation8]  }
  0x5a   : > { %624 = vmatpush3.msra.mxu0 %v284_v2  ;;  %v271_v15 = vld [vmem:[#allocation5 + $0x8] sm:$0xff]  ;;  %v270_v16 = vld [vmem:[#allocation5] sm:$0xff]  ;;  %v269_v17 = vld [vmem:[%s1076_s17] sm:$0xff]  ;;  %s848_s16 = sshll.u32 %s921_s22, 4  ;;  %s849_s16 = int_to_ptr.vmem [resolvable:$false] %s848_s16 }
  0x5b   : > { %625 = vmatprep.subr.mxu0 %v919_v0  ;;  %v387_v18 = vld [vmem:[#allocation7 + $0x78] sm:$0xff]  ;;  %v386_v19 = vld [vmem:[#allocation7 + $0x70] sm:$0xff]  ;;  %v385_v20 = vld [vmem:[#allocation7 + $0x68] sm:$0xff]  ;;  %p846_p1 = pnand %p845_p11, %p1191_p0  ;;  %s850_s14 = scalar_lea.vmem %s849_s16, 256 }
  0x5c   : > { %626 = vmatpush3.msra.mxu0 %v283_v3  ;;  %657 = vmatpush3.msra.mxu1 %v387_v18  ;;  %v384_v21 = vld [vmem:[#allocation7 + $0x60] sm:$0xff]  ;;  %v383_v22 = vld [vmem:[#allocation7 + $0x58] sm:$0xff]  ;;  %v382_v23 = vld [vmem:[#allocation7 + $0x50] sm:$0xff]  ;;  %p851_p6 = scmp.lt.s32.totalorder %s481_s30, %s849_s16  ;;  %p852_p12 = scmp.lt.s32.totalorder %s850_s14, %s844_s9 }
  0x5d   : > { %627 = vmatprep.subr.mxu0 %v919_v0  ;;  %658 = vmatprep.subr.mxu1 %v919_v0  ;;  %v381_v24 = vld [vmem:[#allocation7 + $0x48] sm:$0xff]  ;;  %v380_v25 = vld [vmem:[#allocation7 + $0x40] sm:$0xff]  ;;  %v379_v26 = vld [vmem:[#allocation7 + $0x38] sm:$0xff]  ;;  %p847_p2 = pneg %p846_p1 }
  0x5e   : > { %628 = vmatpush3.msra.mxu0 %v282_v4  ;;  %659 = vmatpush3.msra.mxu1 %v386_v19  ;;  %v378_v27 = vld [vmem:[#allocation7 + $0x30] sm:$0xff]  ;;  %v377_v28 = vld [vmem:[#allocation7 + $0x28] sm:$0xff]  ;;  %v376_v29 = vld [vmem:[#allocation7 + $0x20] sm:$0xff]  ;;  %p853_p7 = por %p852_p12, %p851_p6 }
  0x5f   : > { %629 = vmatprep.subr.mxu0 %v919_v0  ;;  %660 = vmatprep.subr.mxu1 %v919_v0  ;;  %v375_v30 = vld [vmem:[#allocation7 + $0x18] sm:$0xff]  ;;  %v374_v31 = vld [vmem:[#allocation7 + $0x10] sm:$0xff]  ;;  %v373_v32 = vld [vmem:[#allocation7 + $0x8] sm:$0xff] }
  0x60   : > { %630 = vmatpush3.msra.mxu0 %v281_v5  ;;  %661 = vmatpush3.msra.mxu1 %v385_v20  ;;  %v372_v33 = vld [vmem:[#allocation7] sm:$0xff]  ;;  %v581_v34 = vld [vmem:[%s1172_s2] ss:$0 sm:$0xff]  ;;  %p854_p9 = pnand %p853_p7, %p847_p2 }
  0x61   : > { %631 = vmatprep.subr.mxu0 %v919_v0  ;;  %662 = vmatprep.subr.mxu1 %v919_v0  ;;  %v582_v47 = vld [vmem:[%s1174_s4] ss:$0 sm:$0xff] }
  0x62   : > { %632 = vmatpush3.msra.mxu0 %v280_v6  ;;  %663 = vmatpush3.msra.mxu1 %v384_v21 }
  0x63   : > { %633 = vmatprep.subr.mxu0 %v919_v0  ;;  %664 = vmatprep.subr.mxu1 %v919_v0 }
  0x64   : > { %634 = vmatpush3.msra.mxu0 %v279_v7  ;;  %665 = vmatpush3.msra.mxu1 %v383_v22 }
  0x65   : > { %635 = vmatprep.subr.mxu0 %v919_v0  ;;  %666 = vmatprep.subr.mxu1 %v919_v0 }
  0x66   : > { %636 = vmatpush3.msra.mxu0 %v278_v8  ;;  %667 = vmatpush3.msra.mxu1 %v382_v23 }
  0x67   : > { %637 = vmatprep.subr.mxu0 %v919_v0  ;;  %668 = vmatprep.subr.mxu1 %v919_v0 }
  0x68   : > { %638 = vmatpush3.msra.mxu0 %v277_v9  ;;  %669 = vmatpush3.msra.mxu1 %v381_v24 }
  0x69   : > { %639 = vmatprep.subr.mxu0 %v919_v0  ;;  %670 = vmatprep.subr.mxu1 %v919_v0 }
  0x6a   : > { %640 = vmatpush3.msra.mxu0 %v276_v10  ;;  %671 = vmatpush3.msra.mxu1 %v380_v25 }
  0x6b   : > { %641 = vmatprep.subr.mxu0 %v919_v0  ;;  %672 = vmatprep.subr.mxu1 %v919_v0 }
  0x6c   : > { %642 = vmatpush3.msra.mxu0 %v275_v11  ;;  %673 = vmatpush3.msra.mxu1 %v379_v26 }
  0x6d   : > { %643 = vmatprep.subr.mxu0 %v919_v0  ;;  %674 = vmatprep.subr.mxu1 %v919_v0 }
  0x6e   : > { %644 = vmatpush3.msra.mxu0 %v274_v12  ;;  %675 = vmatpush3.msra.mxu1 %v378_v27 }
  0x6f   : > { %645 = vmatprep.subr.mxu0 %v919_v0  ;;  %676 = vmatprep.subr.mxu1 %v919_v0 }
  0x70   : > { %646 = vmatpush3.msra.mxu0 %v273_v13  ;;  %677 = vmatpush3.msra.mxu1 %v377_v28 }
  0x71   : > { %647 = vmatprep.subr.mxu0 %v919_v0  ;;  %678 = vmatprep.subr.mxu1 %v919_v0 }
  0x72   : > { %648 = vmatpush3.msra.mxu0 %v272_v14  ;;  %679 = vmatpush3.msra.mxu1 %v376_v29 }
  0x73   : > { %649 = vmatprep.subr.mxu0 %v919_v0  ;;  %680 = vmatprep.subr.mxu1 %v919_v0 }
  0x74   : > { %650 = vmatpush3.msra.mxu0 %v271_v15  ;;  %681 = vmatpush3.msra.mxu1 %v375_v30 }
  0x75   : > { %651 = vmatprep.subr.mxu0 %v919_v0  ;;  %682 = vmatprep.subr.mxu1 %v919_v0 }
  0x76   : > { %652 = vmatpush3.msra.mxu0 %v270_v16  ;;  %683 = vmatpush3.msra.mxu1 %v374_v31 }
  0x77   : > { %654 = vmatmul.mubr.f32.vlgmr.msra.gmra.mxu0 %v269_v17  ;;  %684 = vmatprep.subr.mxu1 %v919_v0 }
  0x78   : > { %685 = vmatpush3.msra.mxu1 %v373_v32 }
  0x79   : > { %686 = vmatprep.subr.mxu1 %v919_v0 }
  0x7a   : > { %687 = vmatpush3.msra.mxu1 %v372_v33 }
 0x137   : > { %v359_v35 = vpop.f32.mrf.mxu0 }
 0x138   : > { %v360_v36 = vadd.f32 %v581_v34, %v359_v35 }
 0x139   : > { %v655_v37 = vpop.f32.mrf.mxu0 }
 0x13a   : > { %v364_v38 = vmul.f32 %v360_v36, %v360_v36  ;;  %v363_v44 = vmul.f32 0.5, %v360_v36 }
 0x13c   : > { %v365_v39 = vmul.f32 %v364_v38, %v360_v36 }
 0x13e   : > { %v366_v40 = vmul.f32 0.044715, %v365_v39 }
 0x140   : > { %v367_v41 = vadd.f32 %v366_v40, %v360_v36 }
 0x142   : > { %v368_v42 = vmul.f32 0.7978846, %v367_v41 }
 0x144   : > { %762 = vtanh.f32 %v368_v42 }
 0x151   : > { %v763_v43 = vpop.eup %762 }
 0x152   : > { %v370_v45 = vadd.f32 1.0, %v763_v43 }
 0x154   : > { %v371_v46 = vmul.f32 %v370_v45, %v363_v44 }
 0x156   : > { %689 = vmatmul.mubr.f32.vlgmr.msra.gmra.mxu1 %v371_v46 }
 0x216   : > { %v461_v48 = vpop.f32.mrf.mxu1 }
 0x217   : > { %v462_v49 = vadd.f32 %v582_v47, %v461_v48 }
 0x218   : > { %v690_v50 = vpop.f32.mrf.mxu1 }
 0x219   : > { %465 = vst [vmem:[%s268_s12] sm:$0xff] %v462_v49 }
 0x21a   : > { %857 = shalt.err (!%p854_p9)
}
 0x21b   : > { %s858_s17 = scalar_lea.hbm %s1133_s28, 128  ;;  %s862_s26 = scalar_lea.hbm %s1175_s5, 256 }
 0x21c   : > { %p859_p13 = scmp.ne.s32.totalorder %s1133_s28, %s858_s17  ;;  %p863_p4 = scmp.lt.s32.totalorder %s1133_s28, %s1175_s5 }
 0x21d   : > { %p864_p8 = scmp.lt.s32.totalorder %s862_s26, %s858_s17 }
 0x21e   : > { %p860_p5 = pnand %p859_p13, %p1191_p0 }
 0x21f   : > { %p865_p3 = por %p864_p8, %p863_p4 }
 0x220   : > { %p861_p10 = pneg %p860_p5 }
 0x222   : > { %p866_p11 = pnand %p865_p3, %p861_p10 }
 0x224   : > { %869 = shalt.err (!%p866_p11)
}
 0x225   : > { %701 = dma.vmem_to_hbm [thread:$0]  (%p1191_p0), %s481_s30, 128, %s1133_s28, %s467_s7  }
 0x226 PF: > { %s492_s11 = sand.u32 1, %s900_s18   ;;  %p1192_p1 = scmp.ne.s32.totalorder %s1181_s25, 0 }
 0x227   : > { %p1193_p2 = scmp.ge.s32.totalorder %s912_s21, 2  ;;  %s493_s12 = scalar_lea.sflag [#allocation4], %s492_s11 }
 0x229   : > { %p715_p6 = pnand %p1193_p2, %p1192_p1 }
 0x22b   : > { %p716_p12 = pneg %p715_p6 }
 0x22d   : > { %895 = dma.done.wait (%p716_p12), %s493_s12, 128  }
 0x22e   : > { %897 = vsyncadd (%p716_p12), %s493_s12, 4294967168  ;;  %p19_p7 = scmp.ge.s32.totalorder %s1024_s15, 4   ;;  %s1194_s18 = smov %s904_s19 }
 0x22f   : > { %s1195_s19 = smov %s908_s20  ;;  %s1196_s20 = smov %s1040_s27 }
 0x230   : > { %s1197_s21 = smov %s1024_s15  ;;  %21 = sbr.rel (!%p19_p7) target bundleno = 6 (0x6), region = 93 }
 0x235   :  { %498 = vsyncpa [#allocation3], 1 }
 0x236   :  { %500 = vsyncpa [#allocation3 + $0x1], 1 }
 0x237   :  { %501 = vsyncpa [#allocation6], 1 }
 0x238   :  { %502 = vsyncpa [#allocation4], 1 }
 0x239   :  { %504 = vsyncpa [#allocation4 + $0x1], 1 }

</bundles_post_ra>
